<compile_context>
chip_gen: v7x
topology: tpu7x:2x2x1
jax: 0.10.0
libtpu: 0.0.40
codegen_flags: <defaults>
</compile_context>

<pallas_src>
import math
import functools

import jax
import jax.numpy as jnp
from jax.experimental import pallas as pl
from jax.experimental.pallas import tpu as pltpu


# ----------------------------- constants ------------------------------------

_TARGET_BLOCK_BYTES = 2 * 1024 * 1024   # ~2 MiB per x block; with double-buffered
                                        # x / bits / out blocks this stays well below
_VMEM_LIMIT_BYTES = 32 * 1024 * 1024    # the 32 MiB scoped-VMEM limit (v7x-safe).


# ------------------------- sinusoidal table ----------------------------------

def _sinusoid_table(d_model: int, max_len: int) -> jnp.ndarray:
    """(max_len, d_model) float32 table, identical to the PyTorch `pe` buffer."""
    position = jnp.arange(max_len, dtype=jnp.float32)[:, None]              # (L, 1)
    div_term = jnp.exp(jnp.arange(0, d_model, 2, dtype=jnp.float32)
                       * (-math.log(10000.0) / d_model))                    # (ceil(D/2),)
    ang = position * div_term                                               # (L, ceil(D/2))
    pe = jnp.zeros((max_len, d_model), dtype=jnp.float32)
    pe = pe.at[:, 0::2].set(jnp.sin(ang))
    pe = pe.at[:, 1::2].set(jnp.cos(ang)[:, : d_model // 2])                # exact match for even d_model
    return pe


# ----------------------------- Pallas kernels --------------------------------

def _add_pe_kernel(x_ref, pe_ref, o_ref):
    # Elementwise hot path: x + pe (pe broadcasts over the batch/row axis).
    o_ref[...] = x_ref[...] + pe_ref[...]


def _add_pe_dropout_kernel(x_ref, pe_ref, bits_ref, o_ref, *, threshold, scale):
    y = x_ref[...] + pe_ref[...]
    # Integer-threshold dropout: keep iff bits >= threshold  (P(keep) = 1 - p).
    # No uint32 -> float conversion; one select + one mul, all in y.dtype.
    keep = bits_ref[...] >= jnp.uint32(threshold)
    o_ref[...] = jnp.where(keep, y * jnp.asarray(scale, y.dtype), jnp.zeros_like(y))


# ------------------------------ call builders --------------------------------

def _pick_tile(n, bytes_per_unit, align, target=_TARGET_BLOCK_BYTES):
    """Largest leading-axis tile keeping one block <= `target` bytes."""
    t = max(1, int(target) // max(int(bytes_per_unit), 1))
    if t >= n:
        return int(n)
    if align > 1:
        t = max(align, (t // align) * align)
    return int(min(t, n))


def _run(x, pe, bits, p, grid, x_spec, pe_spec, dims):
    out_shape = jax.ShapeDtypeStruct(x.shape, x.dtype)
    cp = pltpu.CompilerParams(dimension_semantics=dims,
                              vmem_limit_bytes=_VMEM_LIMIT_BYTES)
    if bits is None:
        return pl.pallas_call(
            _add_pe_kernel,
            grid=grid,
            in_specs=[x_spec, pe_spec],
            out_specs=x_spec,
            out_shape=out_shape,
            compiler_params=cp,
            input_output_aliases={0: 0},          # output reuses x's HBM buffer
        )(x, pe)

    threshold = min(int(round(p * 4294967296.0)), 4294967295)
    kernel = functools.partial(_add_pe_dropout_kernel,
                               threshold=threshold,
                               scale=1.0 / (1.0 - p))
    return pl.pallas_call(
        kernel,
        grid=grid,
        in_specs=[x_spec, pe_spec, x_spec],       # bits blocked exactly like x
        out_specs=x_spec,
        out_shape=out_shape,
        compiler_params=cp,
        input_output_aliases={0: 0},
    )(x, pe, bits)


def _add_pe_2d(x2, pe2, bits2, p, itemsize, *, pe_rows_broadcast):
    """x2: (R, C) lane-dense slab. pe2: (R, C) or (1, C) (broadcast over rows)."""
    R, C = x2.shape
    row_bytes = C * itemsize
    if row_bytes <= _TARGET_BLOCK_BYTES:
        tc = C
        tr = _pick_tile(R, row_bytes, align=8)
    else:
        tr = min(R, 8)
        tc = min(C, max(128, (_TARGET_BLOCK_BYTES // (tr * itemsize)) // 128 * 128))
    grid = (pl.cdiv(R, tr), pl.cdiv(C, tc))
    x_spec = pl.BlockSpec((tr, tc), lambda i, j: (i, j))
    if pe_rows_broadcast:
        # constant row index -> pe tile stays VMEM-resident across the row axis
        pe_spec = pl.BlockSpec((1, tc), lambda i, j: (0, j))
    else:
        pe_spec = pl.BlockSpec((tr, tc), lambda i, j: (i, j))
    return _run(x2, pe2, bits2, p, grid, x_spec, pe_spec,
                dims=("parallel", "parallel"))


def _add_pe_3d(x, pe3, bits, p, itemsize):
    """x: (S, B, D) with D a multiple of 128. pe3: (S, 1, D), broadcast over B in-kernel."""
    S, B, D = x.shape
    tr = _pick_tile(S, B * D * itemsize, align=1)
    grid = (pl.cdiv(S, tr),)
    x_spec = pl.BlockSpec((tr, B, D), lambda i: (i, 0, 0))
    pe_spec = pl.BlockSpec((tr, 1, D), lambda i: (i, 0, 0))
    return _run(x, pe3, bits, p, grid, x_spec, pe_spec, dims=("parallel",))


# --------------------------------- module ------------------------------------

class PositionalEncoding:
    def __init__(self, d_model, dropout=0.1, max_len=500, batch_first=False):
        self.d_model = int(d_model)
        self.batch_first = bool(batch_first)
        self.p = float(dropout)
        self._pe2d = _sinusoid_table(self.d_model, int(max_len))   # (max_len, d_model)
        self.pe = self._pe2d[:, None, :]                           # (max_len, 1, d_model) — torch buffer layout

    def __call__(self, x, *, training=False, rng=None):
        assert x.ndim == 3, "expected a 3-D activation tensor"
        if self.batch_first:
            bsz, seq, d = x.shape
        else:
            seq, bsz, d = x.shape
        assert d == self.d_model

        pe2d = self._pe2d[:seq].astype(x.dtype)                    # (seq, d) — keep bf16 end-to-end
        itemsize = jnp.dtype(x.dtype).itemsize

        use_dropout = training and self.p > 0.0
        bits = None
        if use_dropout:
            if rng is None:
                rng = jax.random.PRNGKey(0)
            bits = jax.random.bits(rng, x.shape, dtype=jnp.uint32)
            # TODO(synk): on a real TPU the mask bits could be drawn in-kernel with
            # pltpu.prng_seed(seed + pl.program_id(...)) / pltpu.prng_random_bits to
            # avoid this extra HBM pass, but those primitives do not lower under
            # CPU/interpret mode, so uncorrelated per-tile bits are precomputed here.

        if self.batch_first:
            # (batch, seq*d) lane-dense slab; pe is a tiny (1, seq*d) row that stays
            # VMEM-resident across the batch grid axis.
            R, C = bsz, seq * d
            x2 = x.reshape(R, C)
            pe2 = pe2d.reshape(1, C)
            bits2 = None if bits is None else bits.reshape(R, C)
            out2 = _add_pe_2d(x2, pe2, bits2, self.p, itemsize, pe_rows_broadcast=True)
            return out2.reshape(x.shape)

        # seq-first (module default): x is (seq, batch, d)
        if d % 128 == 0:
            # already lane-dense: keep natural 3-D layout, broadcast pe over batch in-kernel
            return _add_pe_3d(x, pe2d[:, None, :], bits, self.p, itemsize)

        # d not a multiple of 128: flatten trailing dims so stores are lane-dense
        # (stored lane width = batch*d); materialize the (small) pe slab wrapper-side.
        R, C = seq, bsz * d
        x2 = x.reshape(R, C)
        pe2 = jnp.broadcast_to(pe2d[:, None, :], (seq, bsz, d)).reshape(R, C)
        bits2 = None if bits is None else bits.reshape(R, C)
        out2 = _add_pe_2d(x2, pe2, bits2, self.p, itemsize, pe_rows_broadcast=False)
        return out2.reshape(x.shape)


# ----------------------------------- main -------------------------------------

if __name__ == "__main__":
    key = jax.random.PRNGKey(0)
    d_model, seq_len, batch = 32, 8, 2
    kx, kbf, kdrop = jax.random.split(key, 3)

    # --- batch_first=False (module default): x is (seq, batch, d_model) -------
    x = jax.random.normal(kx, (seq_len, batch, d_model), dtype=jnp.float32)
    mod = PositionalEncoding(d_model, dropout=0.1, max_len=500, batch_first=False)
    ref = x + mod.pe[:seq_len].astype(x.dtype)

    out = jax.block_until_ready(mod(x, training=False))
    assert out.shape == x.shape and out.dtype == x.dtype
    assert jnp.allclose(out, ref, atol=1e-5, rtol=1e-5), "mismatch vs reference (seq-first)"

    # --- batch_first=True: x is (batch, seq, d_model) -------------------------
    mod_bf = PositionalEncoding(d_model, dropout=0.1, max_len=500, batch_first=True)
    x_bf = jax.random.normal(kbf, (batch, seq_len, d_model), dtype=jnp.float32)
    ref_bf = x_bf + jnp.transpose(mod_bf.pe, (1, 0, 2))[:, :seq_len, :].astype(x_bf.dtype)
    out_bf = jax.block_until_ready(mod_bf(x_bf, training=False))
    assert jnp.allclose(out_bf, ref_bf, atol=1e-5, rtol=1e-5), "mismatch vs reference (batch-first)"

    # --- lane-dense 3-D path (d_model multiple of 128) -------------------------
    mod_128 = PositionalEncoding(128, dropout=0.0, max_len=64, batch_first=False)
    x_128 = jax.random.normal(jax.random.PRNGKey(3), (seq_len, batch, 128), jnp.float32)
    ref_128 = x_128 + mod_128.pe[:seq_len].astype(x_128.dtype)
    out_128 = jax.block_until_ready(mod_128(x_128, training=False))
    assert jnp.allclose(out_128, ref_128, atol=1e-5, rtol=1e-5), "mismatch vs reference (d=128)"

    # --- training mode (dropout active) ----------------------------------------
    p = 0.1
    scale = 1.0 / (1.0 - p)
    out_tr = jax.block_until_ready(mod(x, training=True, rng=kdrop))
    assert out_tr.shape == x.shape and out_tr.dtype == x.dtype
    kept = out_tr != 0
    # kept entries must equal (x + pe) * 1/(1-p); dropped entries are exactly zero
    assert jnp.allclose(jnp.where(kept, out_tr, 0.0),
                        jnp.where(kept, ref * scale, 0.0),
                        atol=1e-5, rtol=1e-5), "dropout values inconsistent with x + pe"

    print("KERNEL_OK")
</pallas_src>

<mosaic_0001>
module attributes {stable_mosaic.version = 11 : i64} {
  func.func @_add_pe_kernel(%arg0: i32, %arg1: i32, %arg2: memref<8x64xf32, #tpu.memory_space<vmem>>, %arg3: memref<8x64xf32, #tpu.memory_space<vmem>>, %arg4: memref<8x64xf32, #tpu.memory_space<vmem>>) attributes {dimension_semantics = [#tpu.dimension_semantics<parallel>, #tpu.dimension_semantics<parallel>], iteration_bounds = array<i64: 1, 1>, scalar_prefetch = 0 : i64, scratch_operands = 0 : i64, tpu.core_type = #tpu.core_type<tc>, window_params = [{transform_indices = @transform_0, window_bounds = array<i64: 8, 64>}, {transform_indices = @transform_1, window_bounds = array<i64: 8, 64>}, {transform_indices = @transform_2, window_bounds = array<i64: 8, 64>}]} {
    %c0 = arith.constant 0 : index
    %c0_0 = arith.constant 0 : index
    %0 = vector.load %arg2[%c0, %c0_0] : memref<8x64xf32, #tpu.memory_space<vmem>>, vector<8x64xf32>
    %c0_1 = arith.constant 0 : index
    %c0_2 = arith.constant 0 : index
    %1 = vector.load %arg3[%c0_1, %c0_2] : memref<8x64xf32, #tpu.memory_space<vmem>>, vector<8x64xf32>
    %2 = arith.addf %0, %1 : vector<8x64xf32>
    %c0_3 = arith.constant 0 : index
    %c0_4 = arith.constant 0 : index
    %3 = vector.load %arg4[%c0_3, %c0_4] : memref<8x64xf32, #tpu.memory_space<vmem>>, vector<8x64xf32>
    tpu.vector_store %arg4[%c0_3, %c0_4], %2 {strides = array<i32>} : memref<8x64xf32, #tpu.memory_space<vmem>>, vector<8x64xf32>,
    return
  }
  func.func @transform_0(%arg0: i32, %arg1: i32) -> (i32, i32) {
    %c0_i32 = arith.constant 0 : i32
    return %arg0, %arg1 : i32, i32
  }
  func.func @transform_1(%arg0: i32, %arg1: i32) -> (i32, i32) {
    %c0_i32 = arith.constant 0 : i32
    return %arg0, %arg1 : i32, i32
  }
  func.func @transform_2(%arg0: i32, %arg1: i32) -> (i32, i32) {
    %c0_i32 = arith.constant 0 : i32
    return %arg0, %arg1 : i32, i32
  }
}

</mosaic_0001>

<bundles_post_ra>
// kernel: tpu_custom_call.1
= control target key start
LH: loop header
LB: loop body
LE: loop exit
PB: predicated region body
PF: predicated region fallthrough
CT: control target
= control target key end

     0   :  { %7 = vsyncpa [#allocation3], 0  ;;  %s138_s0 = inlined_call_operand.hbm [shape: f32[8,64], index: 0, kind: input, shape index: {}, may-alias: {0,2}]   ;;  %s139_s1 = inlined_call_operand.vmem [shape: f32[8,64], index: 1, kind: input, shape index: {}]   ;;  %s140_s2 = inlined_call_operand.hbm [shape: f32[8,64], index: 2, kind: output, shape index: {}, may-alias: {0,2}]  }
   0x1   :  { %8 = vsyncpa [#allocation4], 0  ;;  %s94_s9 = smov [#allocation2]   ;;  %s46_s13 = scalar_lea.hbm %s138_s0, 128 }
   0x2   :  { %s15_s10 = sshll.u32 %s94_s9, 4  ;;  %p47_p0 = scmp.ne.s32.totalorder %s138_s0, %s46_s13  ;;  %s16_s10 = int_to_ptr.vmem [resolvable:$true] %s15_s10 }
   0x3   :  { %p50_p1 = scmp.lt.u32.totalorder %s46_s13, %s138_s0 }
   0x5   :  { %p52_p2 = pnand %p50_p1, %p47_p0 }
   0x7   :  { %55 = shalt.err (!%p52_p2)
}
   0x8   :  { %s56_s18 = scalar_lea.vmem %s16_s10, 128  ;;  %p61_p4 = scmp.lt.s32.totalorder %s16_s10, %s16_s10 }
   0x9   :  { %p57_p3 = scmp.ne.s32.totalorder %s16_s10, %s56_s18  ;;  %p62_p5 = scmp.lt.s32.totalorder %s56_s18, %s56_s18 }
   0xb   :  { %p63_p6 = por %p62_p5, %p61_p4 }
   0xd   :  { %p64_p7 = pnand %p63_p6, %p57_p3 }
   0xf   :  { %67 = shalt.err (!%p64_p7)
}
  0x10   :  { %18 = dma.hbm_to_vmem [thread:$0]  %s138_s0, 128, %s16_s10, [#allocation3]  }
  0x11   :  { %90 = dma.done.wait [#allocation3], 128  }
  0x12   :  { %91 = vsyncadd [#allocation3], 4294967168  ;;  %s95_s21 = smov [#allocation5]   ;;  %v24_v0 = vld [vmem:[#allocation2] sm:$0xff]  ;;  %vm27_vm0 = vcmask 523264  }
  0x13   :  { %s35_s22 = sshll.u32 %s95_s21, 4  ;;  %v25_v1 = vld [vmem:[%s139_s1] sm:$0xff]  ;;  %s36_s22 = int_to_ptr.vmem [resolvable:$true] %s35_s22 }
  0x14   :  { %v26_v2 = vadd.f32 %v25_v1, %v24_v0  ;;  %s68_s25 = scalar_lea.vmem %s36_s22, 128  ;;  %p73_p9 = scmp.lt.s32.totalorder %s36_s22, %s36_s22 }
  0x15   :  { %p69_p8 = scmp.ne.s32.totalorder %s36_s22, %s68_s25  ;;  %p74_p10 = scmp.lt.s32.totalorder %s68_s25, %s68_s25 }
  0x16   :  { %28 = vst.msk [vmem:[#allocation5] sm:$0xff] %vm27_vm0, %v26_v2 }
  0x17   :  { %p75_p11 = por %p74_p10, %p73_p9 }
  0x19   :  { %p76_p12 = pnand %p75_p11, %p69_p8 }
  0x1b   :  { %79 = shalt.err (!%p76_p12)
}
  0x1c   :  { %s80_s27 = scalar_lea.hbm %s140_s2, 128 }
  0x1d   :  { %p81_p13 = scmp.ne.s32.totalorder %s140_s2, %s80_s27  ;;  %p84_p0 = scmp.lt.u32.totalorder %s80_s27, %s140_s2 }
  0x1f   :  { %p86_p1 = pnand %p84_p0, %p81_p13 }
  0x21   :  { %89 = shalt.err (!%p86_p1)
}
  0x22   :  { %38 = dma.vmem_to_hbm [thread:$0]  %s36_s22, 128, %s140_s2, [#allocation4]  }
  0x23   :  { %92 = dma.done.wait [#allocation4], 128  }
  0x24   :  { %93 = vsyncadd [#allocation4], 4294967168 }
  0x25   :  { %42 = vsyncpa [#allocation3], 1 }
  0x26   :  { %43 = vsyncpa [#allocation4], 1 }

</bundles_post_ra>
